<compile_context>
chip_gen: v5e
topology: v5e:2x2
jax: 0.10.0
libtpu: 0.0.40
codegen_flags: <defaults>
</compile_context>

<pallas_src>
import functools

import numpy as np
import jax
import jax.numpy as jnp
from jax.experimental import pallas as pl
from jax.experimental.pallas import tpu as pltpu

HIDDEN = 128       # feature / residual width (matches the PyTorch module)
HEAD_HIDDEN = 64   # per-head hidden width
LANE = 128         # TPU lane width / padded output width


def _round_up(v, m):
    return (v + m - 1) // m * m


def _choose_tb(B):
    # Small batches: one sublane-packed bf16 tile (multiple of 16, not 8).
    if B <= 128:
        return _round_up(B, 16)
    # Large batches: at least 2 tiles (so the "parallel" grid axis shards
    # across both v7x TensorCores), capped at 1024 rows per tile (working set
    # stays a few MiB -- safe under the 32 MiB scoped VMEM limit everywhere
    # and well under v7x's 64 MiB physical VMEM).
    return min(1024, _round_up(-(-B // 2), 128))


# ---------------------------------------------------------------------------
# Parameter init (deterministic, mirrors torch.nn.init.orthogonal_ + zero bias)
# ---------------------------------------------------------------------------
def orthogonal_init(key, out_dim, in_dim, gain):
    a = jax.random.normal(key, (out_dim, in_dim), dtype=jnp.float32)
    transposed = out_dim < in_dim
    if transposed:
        a = a.T
    q, r = jnp.linalg.qr(a)
    q = q * jnp.sign(jnp.diag(r))
    if transposed:
        q = q.T
    return (gain * q).astype(jnp.float32)


def make_linear_params(key, in_dim, out_dim, gain):
    w = orthogonal_init(key, out_dim, in_dim, gain)   # torch layout (out, in)
    w_t = jnp.transpose(w)                            # kernel layout (in, out)
    b = jnp.zeros((1, out_dim), dtype=jnp.float32)
    return w_t, b


def init_params(key, obs_size, action_space):
    keys = jax.random.split(key, 9)
    sqrt2 = float(np.sqrt(2.0))
    p = {}
    p["wf"], p["bf"] = make_linear_params(keys[0], obs_size, HIDDEN, sqrt2)
    p["w11"], p["b11"] = make_linear_params(keys[1], HIDDEN, HIDDEN, sqrt2)
    p["w12"], p["b12"] = make_linear_params(keys[2], HIDDEN, HIDDEN, sqrt2)
    p["w21"], p["b21"] = make_linear_params(keys[3], HIDDEN, HIDDEN, sqrt2)
    p["w22"], p["b22"] = make_linear_params(keys[4], HIDDEN, HIDDEN, sqrt2)
    p["wv1"], p["bv1"] = make_linear_params(keys[5], HIDDEN, HEAD_HIDDEN, sqrt2)
    p["wv2"], p["bv2"] = make_linear_params(keys[6], HEAD_HIDDEN, 1, 1.0)
    p["wa1"], p["ba1"] = make_linear_params(keys[7], HIDDEN, HEAD_HIDDEN, sqrt2)
    p["wa2"], p["ba2"] = make_linear_params(keys[8], HEAD_HIDDEN, action_space, 0.01)
    return p


# ---------------------------------------------------------------------------
# Pack / pad / fuse params into the layout the kernel expects.
# ---------------------------------------------------------------------------
def prepare_kernel_params(p, obs_size, action_space):
    # Lanes used in the fused head-2 output: [0..A-1]=advantages, [A]=sum(adv),
    # [A+1]=value, rest zero.
    assert action_space + 2 <= LANE, "action_space must fit in one lane tile"
    bf16 = jnp.bfloat16
    obs_pad = _round_up(obs_size, 16)
    A = action_space

    # Feature weight: (obs_pad, 128), zero rows beyond the real obs dim.
    wf = jnp.zeros((obs_pad, HIDDEN), jnp.float32).at[:obs_size, :].set(p["wf"])

    # Fused head first layer: [value | advantage] -> one (128, 128) matmul.
    wh1 = jnp.concatenate([p["wv1"], p["wa1"]], axis=1)          # (128, 128)
    bh1 = jnp.concatenate([p["bv1"], p["ba1"]], axis=1)          # (1, 128)

    # Fused block-diagonal head second layer, zero-padded to (128, 128):
    #   lanes 0..A-1 <- advantage (rows 64..127 = wa2)
    #   lane  A      <- sum over advantage columns (folds the mean reduction
    #                   into the matmul; bias = sum(ba2))
    #   lane  A+1    <- value (rows 0..63 = wv2)
    #   remaining lanes exactly zero.
    wh2 = jnp.zeros((HIDDEN, LANE), jnp.float32)
    wh2 = wh2.at[HEAD_HIDDEN:, 0:A].set(p["wa2"])
    wh2 = wh2.at[HEAD_HIDDEN:, A:A + 1].set(
        jnp.sum(p["wa2"], axis=1, keepdims=True))
    wh2 = wh2.at[:HEAD_HIDDEN, A + 1:A + 2].set(p["wv2"])
    bh2 = jnp.zeros((1, LANE), jnp.float32)
    bh2 = bh2.at[:, 0:A].set(p["ba2"])
    bh2 = bh2.at[:, A:A + 1].set(jnp.sum(p["ba2"], axis=1, keepdims=True))
    bh2 = bh2.at[:, A + 1:A + 2].set(p["bv2"])

    # Pack the six square (128,128) weights and the seven (1,128) biases so the
    # kernel takes 3 weight refs (wf, W, B) instead of 14.
    w_pack = jnp.stack(
        [p["w11"], p["w12"], p["w21"], p["w22"], wh1, wh2]).astype(bf16)
    b_pack = jnp.stack(
        [p["bf"], p["b11"], p["b12"], p["b21"], p["b22"], bh1, bh2])  # f32

    return dict(wf=wf.astype(bf16), w=w_pack, b=b_pack, obs_pad=obs_pad)


# ---------------------------------------------------------------------------
# Pallas kernel: full DuelingDQN forward for one (TB, obs_pad) batch tile.
# ---------------------------------------------------------------------------
def dueling_dqn_kernel(
    x_ref,          # (TB, obs_pad) bf16
    wf_ref,         # (obs_pad, 128) bf16
    w_ref,          # (6, 128, 128) bf16: w11, w12, w21, w22, wh1, wh2
    b_ref,          # (7, 1, 128)   f32 : bf, b11, b12, b21, b22, bh1, bh2
    out_ref,        # (TB, 128)
    *, inv_num_actions, action_space,
):
    f32 = jnp.float32
    bf16 = jnp.bfloat16

    x = x_ref[...]

    # feature = LeakyReLU(0.1)(x @ Wf + bf)
    f = jnp.dot(x, wf_ref[...], preferred_element_type=f32) + b_ref[0]
    f = jnp.maximum(f, 0.1 * f)

    # Residual block 1: f = f + Linear(ReLU(Linear(f)))
    h = jnp.dot(f.astype(bf16), w_ref[0], preferred_element_type=f32) + b_ref[1]
    h = jnp.maximum(h, 0.0)
    f = f + jnp.dot(h.astype(bf16), w_ref[1], preferred_element_type=f32) + b_ref[2]

    # Residual block 2
    h = jnp.dot(f.astype(bf16), w_ref[2], preferred_element_type=f32) + b_ref[3]
    h = jnp.maximum(h, 0.0)
    f = f + jnp.dot(h.astype(bf16), w_ref[3], preferred_element_type=f32) + b_ref[4]

    # Fused heads, layer 1: h = ReLU(f @ [Wv1 | Wa1] + [bv1 | ba1])   (TB, 128)
    h = jnp.dot(f.astype(bf16), w_ref[4], preferred_element_type=f32) + b_ref[5]
    h = jnp.maximum(h, 0.0)

    # Fused heads, layer 2 (block-diagonal + folded advantage-sum column):
    #   z[:, 0:A] = A_j,  z[:, A] = sum_j A_j,  z[:, A+1] = V,  rest = 0.
    z = jnp.dot(h.astype(bf16), w_ref[5], preferred_element_type=f32) + b_ref[6]

    a = action_space
    v = z[:, a + 1:a + 2]
    mean_a = z[:, a:a + 1] * inv_num_actions

    # Lane-dense store; lanes 0..A-1 hold Q = A_j + V - mean(A).  Lanes >= A
    # contain junk (they also get +(V - mean_A)); the wrapper slices [:, :A].
    out_ref[...] = (z + (v - mean_a)).astype(out_ref.dtype)


# ---------------------------------------------------------------------------
# Wrapper: batch-tiled pallas_call.
# ---------------------------------------------------------------------------
def dueling_dqn_forward(x, kparams, action_space, out_dtype=jnp.float32):
    B, obs = x.shape
    wf, w, b = kparams["wf"], kparams["w"], kparams["b"]
    obs_pad = wf.shape[0]
    assert obs <= obs_pad

    TB = _choose_tb(B)
    B_pad = _round_up(B, TB)
    grid = (B_pad // TB,)

    # Cast to bf16 FIRST (halves prep + DMA bytes), then zero-pad batch rows
    # and the (small) obs padding.  Padded rows flow through the net and are
    # sliced off at the end.
    x_bf = x.astype(jnp.bfloat16)
    if B_pad != B or obs_pad != obs:
        x_bf = jnp.pad(x_bf, ((0, B_pad - B), (0, obs_pad - obs)))

    x_spec = pl.BlockSpec((TB, obs_pad), lambda i: (i, 0))
    wf_spec = pl.BlockSpec(wf.shape, lambda i: (0, 0))
    w_spec = pl.BlockSpec(w.shape, lambda i: (0, 0, 0))
    b_spec = pl.BlockSpec(b.shape, lambda i: (0, 0, 0))
    out_spec = pl.BlockSpec((TB, LANE), lambda i: (i, 0))

    kernel = functools.partial(dueling_dqn_kernel,
                               inv_num_actions=1.0 / float(action_space),
                               action_space=action_space)

    # 1 (TB,obs_pad)x(obs_pad,128) + 6 (TB,128)x(128,128) MXU passes per tile.
    flops = 2 * B_pad * (obs_pad + 6 * HIDDEN) * LANE
    bytes_accessed = int(
        x_bf.size * 2 + wf.size * 2 + w.size * 2 + b.size * 4
        + B_pad * LANE * jnp.dtype(out_dtype).itemsize)

    out = pl.pallas_call(
        kernel,
        out_shape=jax.ShapeDtypeStruct((B_pad, LANE), out_dtype),
        grid=grid,
        in_specs=[x_spec, wf_spec, w_spec, b_spec],
        out_specs=out_spec,
        compiler_params=pltpu.CompilerParams(
            dimension_semantics=("parallel",),
            vmem_limit_bytes=32 * 1024 * 1024,
        ),
        cost_estimate=pl.CostEstimate(
            flops=flops, transcendentals=0, bytes_accessed=bytes_accessed),
    )(x_bf, wf, w, b)

    # Q values live in lanes 0..A-1 (lane-aligned slice).
    return out[:B, :action_space]


# ---------------------------------------------------------------------------
# Pure-JAX reference (mirrors the PyTorch module exactly).
# ---------------------------------------------------------------------------
def reference_forward(x, p):
    f = x @ p["wf"] + p["bf"]
    f = jnp.where(f > 0, f, 0.1 * f)
    f = f + (jnp.maximum(f @ p["w11"] + p["b11"], 0.0) @ p["w12"] + p["b12"])
    f = f + (jnp.maximum(f @ p["w21"] + p["b21"], 0.0) @ p["w22"] + p["b22"])
    v = jnp.maximum(f @ p["wv1"] + p["bv1"], 0.0) @ p["wv2"] + p["bv2"]
    a = jnp.maximum(f @ p["wa1"] + p["ba1"], 0.0) @ p["wa2"] + p["ba2"]
    return v + a - jnp.mean(a, axis=1, keepdims=True)


def _bf16_round_params(p):
    # Round weights through bf16 (like the kernel stores them) so the
    # comparison isolates kernel correctness from the quantization choice.
    return {k: (v.astype(jnp.bfloat16).astype(jnp.float32) if k.startswith("w") else v)
            for k, v in p.items()}


if __name__ == "__main__":
    obs_size = 32
    action_space = 8
    batch = 8

    key = jax.random.PRNGKey(0)
    k_x, k_p, k_x2 = jax.random.split(key, 3)

    params = init_params(k_p, obs_size, action_space)
    kparams = prepare_kernel_params(params, obs_size, action_space)

    # Small case (single 16-row tile, obs padded 32 -> 32).
    x = jax.random.normal(k_x, (batch, obs_size), dtype=jnp.float32)
    out = jax.block_until_ready(dueling_dqn_forward(x, kparams, action_space))
    assert out.shape == (batch, action_space)

    x_q = x.astype(jnp.bfloat16).astype(jnp.float32)
    ref = reference_forward(x_q, _bf16_round_params(params))
    np.testing.assert_allclose(np.asarray(out), np.asarray(ref), rtol=2e-2, atol=2e-2)

    # Larger case exercising the multi-tile batch grid (TB=256, 2 tiles,
    # padded rows) and the v7x two-TensorCore sharding path.
    batch2 = 300
    x2 = jax.random.normal(k_x2, (batch2, obs_size), dtype=jnp.float32)
    out2 = jax.block_until_ready(dueling_dqn_forward(x2, kparams, action_space))
    assert out2.shape == (batch2, action_space)

    x2_q = x2.astype(jnp.bfloat16).astype(jnp.float32)
    ref2 = reference_forward(x2_q, _bf16_round_params(params))
    np.testing.assert_allclose(np.asarray(out2), np.asarray(ref2), rtol=2e-2, atol=2e-2)

    print("KERNEL_OK")
</pallas_src>

<mosaic_0001>
module attributes {stable_mosaic.version = 11 : i64} {
  func.func @dueling_dqn_kernel(%arg0: i32, %arg1: memref<16x32xbf16, #tpu.memory_space<vmem>>, %arg2: memref<32x128xbf16, #tpu.memory_space<vmem>>, %arg3: memref<6x128x128xbf16, #tpu.memory_space<vmem>>, %arg4: memref<7x1x128xf32, #tpu.memory_space<vmem>>, %arg5: memref<16x128xf32, #tpu.memory_space<vmem>>) attributes {dimension_semantics = [#tpu.dimension_semantics<parallel>], iteration_bounds = array<i64: 1>, scalar_prefetch = 0 : i64, scratch_operands = 0 : i64, tpu.core_type = #tpu.core_type<tc>, window_params = [{transform_indices = @transform_0, window_bounds = array<i64: 16, 32>}, {pipeline_mode = #tpu.pipeline_mode<synchronous>, transform_indices = @transform_1, window_bounds = array<i64: 32, 128>}, {pipeline_mode = #tpu.pipeline_mode<synchronous>, transform_indices = @transform_2, window_bounds = array<i64: 6, 128, 128>}, {pipeline_mode = #tpu.pipeline_mode<synchronous>, transform_indices = @transform_3, window_bounds = array<i64: 7, 1, 128>}, {transform_indices = @transform_4, window_bounds = array<i64: 16, 128>}]} {
    %c0 = arith.constant 0 : index
    %c0_0 = arith.constant 0 : index
    %0 = vector.load %arg1[%c0, %c0_0] : memref<16x32xbf16, #tpu.memory_space<vmem>>, vector<16x32xbf16>
    %c0_1 = arith.constant 0 : index
    %c0_2 = arith.constant 0 : index
    %1 = vector.load %arg2[%c0_1, %c0_2] : memref<32x128xbf16, #tpu.memory_space<vmem>>, vector<32x128xbf16>
    %cst = arith.constant dense<0.000000e+00> : vector<16x128xf32>
    %2 = tpu.matmul %0, %1, %cst {dimension_numbers = #tpu.dot_dimension_numbers<[1], [0], [0], [1], [0, 0, 1, 1], [], []>} : vector<16x32xbf16>, vector<32x128xbf16>, vector<16x128xf32> -> vector<16x128xf32>
    %c0_3 = arith.constant 0 : index
    %c0_4 = arith.constant 0 : index
    %c0_5 = arith.constant 0 : index
    %3 = vector.load %arg4[%c0_3, %c0_4, %c0_5] : memref<7x1x128xf32, #tpu.memory_space<vmem>>, vector<1x1x128xf32>
    %4 = vector.shape_cast %3 : vector<1x1x128xf32> to vector<1x128xf32>
    %5 = vector.broadcast %4 : vector<1x128xf32> to vector<16x128xf32>
    %6 = arith.addf %2, %5 : vector<16x128xf32>
    %cst_6 = arith.constant 1.000000e-01 : f32
    %7 = vector.broadcast %cst_6 : f32 to vector<16x128xf32>
    %8 = arith.mulf %7, %6 : vector<16x128xf32>
    %9 = arith.maximumf %6, %8 : vector<16x128xf32>
    %10 = arith.truncf %9 : vector<16x128xf32> to vector<16x128xbf16>
    %c0_7 = arith.constant 0 : index
    %c0_8 = arith.constant 0 : index
    %c0_9 = arith.constant 0 : index
    %11 = vector.load %arg3[%c0_7, %c0_8, %c0_9] : memref<6x128x128xbf16, #tpu.memory_space<vmem>>, vector<1x128x128xbf16>
    %12 = vector.shape_cast %11 : vector<1x128x128xbf16> to vector<128x128xbf16>
    %cst_10 = arith.constant dense<0.000000e+00> : vector<16x128xf32>
    %13 = tpu.matmul %10, %12, %cst_10 {dimension_numbers = #tpu.dot_dimension_numbers<[1], [0], [0], [1], [0, 0, 1, 1], [], []>} : vector<16x128xbf16>, vector<128x128xbf16>, vector<16x128xf32> -> vector<16x128xf32>
    %c1 = arith.constant 1 : index
    %c0_11 = arith.constant 0 : index
    %c0_12 = arith.constant 0 : index
    %14 = vector.load %arg4[%c1, %c0_11, %c0_12] : memref<7x1x128xf32, #tpu.memory_space<vmem>>, vector<1x1x128xf32>
    %15 = vector.shape_cast %14 : vector<1x1x128xf32> to vector<1x128xf32>
    %16 = vector.broadcast %15 : vector<1x128xf32> to vector<16x128xf32>
    %17 = arith.addf %13, %16 : vector<16x128xf32>
    %cst_13 = arith.constant 0.000000e+00 : f32
    %18 = vector.broadcast %cst_13 : f32 to vector<16x128xf32>
    %19 = arith.maximumf %17, %18 : vector<16x128xf32>
    %20 = arith.truncf %19 : vector<16x128xf32> to vector<16x128xbf16>
    %c1_14 = arith.constant 1 : index
    %c0_15 = arith.constant 0 : index
    %c0_16 = arith.constant 0 : index
    %21 = vector.load %arg3[%c1_14, %c0_15, %c0_16] : memref<6x128x128xbf16, #tpu.memory_space<vmem>>, vector<1x128x128xbf16>
    %22 = vector.shape_cast %21 : vector<1x128x128xbf16> to vector<128x128xbf16>
    %cst_17 = arith.constant dense<0.000000e+00> : vector<16x128xf32>
    %23 = tpu.matmul %20, %22, %cst_17 {dimension_numbers = #tpu.dot_dimension_numbers<[1], [0], [0], [1], [0, 0, 1, 1], [], []>} : vector<16x128xbf16>, vector<128x128xbf16>, vector<16x128xf32> -> vector<16x128xf32>
    %24 = arith.addf %9, %23 : vector<16x128xf32>
    %c2 = arith.constant 2 : index
    %c0_18 = arith.constant 0 : index
    %c0_19 = arith.constant 0 : index
    %25 = vector.load %arg4[%c2, %c0_18, %c0_19] : memref<7x1x128xf32, #tpu.memory_space<vmem>>, vector<1x1x128xf32>
    %26 = vector.shape_cast %25 : vector<1x1x128xf32> to vector<1x128xf32>
    %27 = vector.broadcast %26 : vector<1x128xf32> to vector<16x128xf32>
    %28 = arith.addf %24, %27 : vector<16x128xf32>
    %29 = arith.truncf %28 : vector<16x128xf32> to vector<16x128xbf16>
    %c2_20 = arith.constant 2 : index
    %c0_21 = arith.constant 0 : index
    %c0_22 = arith.constant 0 : index
    %30 = vector.load %arg3[%c2_20, %c0_21, %c0_22] : memref<6x128x128xbf16, #tpu.memory_space<vmem>>, vector<1x128x128xbf16>
    %31 = vector.shape_cast %30 : vector<1x128x128xbf16> to vector<128x128xbf16>
    %cst_23 = arith.constant dense<0.000000e+00> : vector<16x128xf32>
    %32 = tpu.matmul %29, %31, %cst_23 {dimension_numbers = #tpu.dot_dimension_numbers<[1], [0], [0], [1], [0, 0, 1, 1], [], []>} : vector<16x128xbf16>, vector<128x128xbf16>, vector<16x128xf32> -> vector<16x128xf32>
    %c3 = arith.constant 3 : index
    %c0_24 = arith.constant 0 : index
    %c0_25 = arith.constant 0 : index
    %33 = vector.load %arg4[%c3, %c0_24, %c0_25] : memref<7x1x128xf32, #tpu.memory_space<vmem>>, vector<1x1x128xf32>
    %34 = vector.shape_cast %33 : vector<1x1x128xf32> to vector<1x128xf32>
    %35 = vector.broadcast %34 : vector<1x128xf32> to vector<16x128xf32>
    %36 = arith.addf %32, %35 : vector<16x128xf32>
    %cst_26 = arith.constant 0.000000e+00 : f32
    %37 = vector.broadcast %cst_26 : f32 to vector<16x128xf32>
    %38 = arith.maximumf %36, %37 : vector<16x128xf32>
    %39 = arith.truncf %38 : vector<16x128xf32> to vector<16x128xbf16>
    %c3_27 = arith.constant 3 : index
    %c0_28 = arith.constant 0 : index
    %c0_29 = arith.constant 0 : index
    %40 = vector.load %arg3[%c3_27, %c0_28, %c0_29] : memref<6x128x128xbf16, #tpu.memory_space<vmem>>, vector<1x128x128xbf16>
    %41 = vector.shape_cast %40 : vector<1x128x128xbf16> to vector<128x128xbf16>
    %cst_30 = arith.constant dense<0.000000e+00> : vector<16x128xf32>
    %42 = tpu.matmul %39, %41, %cst_30 {dimension_numbers = #tpu.dot_dimension_numbers<[1], [0], [0], [1], [0, 0, 1, 1], [], []>} : vector<16x128xbf16>, vector<128x128xbf16>, vector<16x128xf32> -> vector<16x128xf32>
    %43 = arith.addf %28, %42 : vector<16x128xf32>
    %c4 = arith.constant 4 : index
    %c0_31 = arith.constant 0 : index
    %c0_32 = arith.constant 0 : index
    %44 = vector.load %arg4[%c4, %c0_31, %c0_32] : memref<7x1x128xf32, #tpu.memory_space<vmem>>, vector<1x1x128xf32>
    %45 = vector.shape_cast %44 : vector<1x1x128xf32> to vector<1x128xf32>
    %46 = vector.broadcast %45 : vector<1x128xf32> to vector<16x128xf32>
    %47 = arith.addf %43, %46 : vector<16x128xf32>
    %48 = arith.truncf %47 : vector<16x128xf32> to vector<16x128xbf16>
    %c4_33 = arith.constant 4 : index
    %c0_34 = arith.constant 0 : index
    %c0_35 = arith.constant 0 : index
    %49 = vector.load %arg3[%c4_33, %c0_34, %c0_35] : memref<6x128x128xbf16, #tpu.memory_space<vmem>>, vector<1x128x128xbf16>
    %50 = vector.shape_cast %49 : vector<1x128x128xbf16> to vector<128x128xbf16>
    %cst_36 = arith.constant dense<0.000000e+00> : vector<16x128xf32>
    %51 = tpu.matmul %48, %50, %cst_36 {dimension_numbers = #tpu.dot_dimension_numbers<[1], [0], [0], [1], [0, 0, 1, 1], [], []>} : vector<16x128xbf16>, vector<128x128xbf16>, vector<16x128xf32> -> vector<16x128xf32>
    %c5 = arith.constant 5 : index
    %c0_37 = arith.constant 0 : index
    %c0_38 = arith.constant 0 : index
    %52 = vector.load %arg4[%c5, %c0_37, %c0_38] : memref<7x1x128xf32, #tpu.memory_space<vmem>>, vector<1x1x128xf32>
    %53 = vector.shape_cast %52 : vector<1x1x128xf32> to vector<1x128xf32>
    %54 = vector.broadcast %53 : vector<1x128xf32> to vector<16x128xf32>
    %55 = arith.addf %51, %54 : vector<16x128xf32>
    %cst_39 = arith.constant 0.000000e+00 : f32
    %56 = vector.broadcast %cst_39 : f32 to vector<16x128xf32>
    %57 = arith.maximumf %55, %56 : vector<16x128xf32>
    %58 = arith.truncf %57 : vector<16x128xf32> to vector<16x128xbf16>
    %c5_40 = arith.constant 5 : index
    %c0_41 = arith.constant 0 : index
    %c0_42 = arith.constant 0 : index
    %59 = vector.load %arg3[%c5_40, %c0_41, %c0_42] : memref<6x128x128xbf16, #tpu.memory_space<vmem>>, vector<1x128x128xbf16>
    %60 = vector.shape_cast %59 : vector<1x128x128xbf16> to vector<128x128xbf16>
    %cst_43 = arith.constant dense<0.000000e+00> : vector<16x128xf32>
    %61 = tpu.matmul %58, %60, %cst_43 {dimension_numbers = #tpu.dot_dimension_numbers<[1], [0], [0], [1], [0, 0, 1, 1], [], []>} : vector<16x128xbf16>, vector<128x128xbf16>, vector<16x128xf32> -> vector<16x128xf32>
    %c6 = arith.constant 6 : index
    %c0_44 = arith.constant 0 : index
    %c0_45 = arith.constant 0 : index
    %62 = vector.load %arg4[%c6, %c0_44, %c0_45] : memref<7x1x128xf32, #tpu.memory_space<vmem>>, vector<1x1x128xf32>
    %63 = vector.shape_cast %62 : vector<1x1x128xf32> to vector<1x128xf32>
    %64 = vector.broadcast %63 : vector<1x128xf32> to vector<16x128xf32>
    %65 = arith.addf %61, %64 : vector<16x128xf32>
    %66 = vector.extract_strided_slice %65 {offsets = [0, 9], sizes = [16, 1], strides = [1, 1]} : vector<16x128xf32> to vector<16x1xf32>
    %67 = vector.extract_strided_slice %65 {offsets = [0, 8], sizes = [16, 1], strides = [1, 1]} : vector<16x128xf32> to vector<16x1xf32>
    %cst_46 = arith.constant 1.250000e-01 : f32
    %68 = vector.broadcast %cst_46 : f32 to vector<16x1xf32>
    %69 = arith.mulf %67, %68 : vector<16x1xf32>
    %70 = arith.subf %66, %69 : vector<16x1xf32>
    %71 = vector.broadcast %70 : vector<16x1xf32> to vector<16x128xf32>
    %72 = arith.addf %65, %71 : vector<16x128xf32>
    %c0_47 = arith.constant 0 : index
    %c0_48 = arith.constant 0 : index
    %73 = vector.load %arg5[%c0_47, %c0_48] : memref<16x128xf32, #tpu.memory_space<vmem>>, vector<16x128xf32>
    tpu.vector_store %arg5[%c0_47, %c0_48], %72 {strides = array<i32>} : memref<16x128xf32, #tpu.memory_space<vmem>>, vector<16x128xf32>,
    return
  }
  func.func @transform_0(%arg0: i32) -> (i32, i32) {
    %c0_i32 = arith.constant 0 : i32
    %c0_i32_0 = arith.constant 0 : i32
    return %arg0, %c0_i32 : i32, i32
  }
  func.func @transform_1(%arg0: i32) -> (i32, i32) {
    %c0_i32 = arith.constant 0 : i32
    %c0_i32_0 = arith.constant 0 : i32
    %c0_i32_1 = arith.constant 0 : i32
    return %c0_i32, %c0_i32_0 : i32, i32
  }
  func.func @transform_2(%arg0: i32) -> (i32, i32, i32) {
    %c0_i32 = arith.constant 0 : i32
    %c0_i32_0 = arith.constant 0 : i32
    %c0_i32_1 = arith.constant 0 : i32
    %c0_i32_2 = arith.constant 0 : i32
    return %c0_i32, %c0_i32_0, %c0_i32_1 : i32, i32, i32
  }
  func.func @transform_3(%arg0: i32) -> (i32, i32, i32) {
    %c0_i32 = arith.constant 0 : i32
    %c0_i32_0 = arith.constant 0 : i32
    %c0_i32_1 = arith.constant 0 : i32
    %c0_i32_2 = arith.constant 0 : i32
    return %c0_i32, %c0_i32_0, %c0_i32_1 : i32, i32, i32
  }
  func.func @transform_4(%arg0: i32) -> (i32, i32) {
    %c0_i32 = arith.constant 0 : i32
    %c0_i32_0 = arith.constant 0 : i32
    return %arg0, %c0_i32 : i32, i32
  }
}

</mosaic_0001>

<bundles_post_ra>
// kernel: tpu_custom_call.1
= control target key start
LH: loop header
LB: loop body
LE: loop exit
PB: predicated region body
PF: predicated region fallthrough
CT: control target
= control target key end

     0   :  { %9 = vsyncpa [#allocation3], 0  ;;  %s1161_s0 = inlined_call_operand.hbm [shape: bf16[16,32], index: 0, kind: input, shape index: {}]   ;;  %s1162_s1 = inlined_call_operand.hbm [shape: bf16[32,128], index: 1, kind: input, shape index: {}]   ;;  %s1163_s2 = inlined_call_operand.hbm [shape: bf16[6,128,128], index: 2, kind: input, shape index: {}]   ;;  %s1164_s3 = inlined_call_operand.hbm [shape: f32[7,1,128], index: 3, kind: input, shape index: {}]   ;;  %s1165_s4 = inlined_call_operand.hbm [shape: f32[16,128], index: 4, kind: output, shape index: {}]  }
   0x1   :  { %10 = vsyncpa [#allocation6], 0 }
   0x2   :  { %11 = vsyncpa [#allocation9], 0 }
   0x3   :  { %12 = vsyncpa [#allocation4], 0  ;;  %s30_s17 = sshll.u32 %s1162_s1, 4  ;;  %s1106_s18 = smov [#allocation5]   ;;  %s31_s17 = int_to_ptr.hbm [resolvable:$true] %s30_s17 }
   0x4   :  { %s32_s19 = sshll.u32 %s1106_s18, 4  ;;  %s17_s22 = sshll.u32 %s1161_s0, 4  ;;  %s33_s19 = int_to_ptr.vmem [resolvable:$true] %s32_s19  ;;  %s18_s22 = int_to_ptr.hbm [resolvable:$true] %s17_s22 }
   0x5   :  { %s1107_s23 = smov 64   ;;  %s1108_s24 = smov 4  }
   0x6   :  { %38 = dma.hbm_to_vmem [thread:$0]  %s31_s17, 256, %s33_s19, [#allocation6], %s1107_s23, %s1107_s23, %s1108_s24  }
   0x7   :  { %s1109_s25 = smov [#allocation2]   ;;  %s43_s29 = sshll.u32 %s1163_s2, 4  ;;  %s44_s29 = int_to_ptr.hbm [resolvable:$true] %s43_s29 }
   0x8   :  { %s19_s26 = sshll.u32 %s1109_s25, 4  ;;  %s56_s5 = sshll.u32 %s1164_s3, 4  ;;  %s20_s26 = int_to_ptr.vmem [resolvable:$true] %s19_s26  ;;  %s57_s5 = int_to_ptr.hbm [resolvable:$true] %s56_s5 }
   0x9   :  { %25 = dma.hbm_to_vmem [thread:$0]  %s18_s22, 128, %s20_s26, [#allocation3], %s1107_s23, %s1107_s23, %s1108_s24  }
   0xa   :  { %s1110_s6 = smov [#allocation7]   ;;  %s1111_s0 = smov [#allocation8]  }
   0xb   :  { %s45_s7 = sshll.u32 %s1110_s6, 4  ;;  %s58_s8 = sshll.u32 %s1111_s0, 4  ;;  %s46_s7 = int_to_ptr.vmem [resolvable:$true] %s45_s7  ;;  %s59_s8 = int_to_ptr.vmem [resolvable:$true] %s58_s8 }
   0xc   :  { %51 = dma.hbm_to_vmem [thread:$0]  %s44_s29, 6144, %s46_s7, [#allocation6], %s1107_s23, %s1107_s23, %s1108_s24  }
   0xd   :  { %s1112_s9 = smov 16   ;;  %s1113_s10 = smov 1  }
   0xe   :  { %64 = dma.hbm_to_vmem [thread:$0]  %s57_s5, 112, %s59_s8, [#allocation9], %s1112_s9, %s1112_s9, %s1113_s10  }
   0xf   :  { %1098 = dma.done.wait [#allocation3], 128  }
  0x10   :  { %1099 = vsyncadd [#allocation3], 4294967168 }
  0x11   :  { %1100 = dma.done.wait [#allocation6], 6400  }
  0x12   :  { %1101 = vsyncadd [#allocation6], 4294960896 }
  0x13   :  { %1102 = dma.done.wait [#allocation9], 112  }
  0x14   :  { %1103 = vsyncadd [#allocation9], 4294967184  ;;  %v908_v0 = vld [vmem:[#allocation5 + $0x8] sm:$0xff]  ;;  %v907_v2 = vld [vmem:[#allocation5] sm:$0xff]  ;;  %vm109_vm0 = vcmask 261120   ;;  %s1115_s2 = smov [#allocation10]  }
  0x15   :  { %v916_v1 = vld [vmem:[#allocation7 + $0x38] sm:$0xff]  ;;  %119 = vmatpush.bf16.msra.mxu0 %v908_v0  ;;  %v915_v3 = vld [vmem:[#allocation7 + $0x30] sm:$0xff]  ;;  %v906_v4 = vld [vmem:[#allocation2] sm:$0xff]  ;;  %s684_s3 = sshll.u32 %s1115_s2, 4  ;;  %s686_s13 = sshll.u32 %s1165_s4, 4  ;;  %s685_s3 = int_to_ptr.vmem [resolvable:$true] %s684_s3  ;;  %s687_s13 = int_to_ptr.hbm [resolvable:$true] %s686_s13 }
  0x16   :  { %201 = vmatpush.bf16.msra.mxu1 %v916_v1  ;;  %v914_v5 = vld [vmem:[#allocation7 + $0x28] sm:$0xff]  ;;  %v913_v6 = vld [vmem:[#allocation7 + $0x20] sm:$0xff]  ;;  %v912_v7 = vld [vmem:[#allocation7 + $0x18] sm:$0xff]  ;;  %s1116_s14 = smov 128   ;;  %s1117_s15 = smov 8  }
  0x17   :  { %v911_v8 = vld [vmem:[#allocation7 + $0x10] sm:$0xff]  ;;  %v910_v9 = vld [vmem:[#allocation7 + $0x8] sm:$0xff]  ;;  %v909_v10 = vld [vmem:[#allocation7] sm:$0xff] }
  0x18   :  { %v924_v11 = vld [vmem:[#allocation7 + $0x78] sm:$0xff]  ;;  %v923_v12 = vld [vmem:[#allocation7 + $0x70] sm:$0xff]  ;;  %v922_v13 = vld [vmem:[#allocation7 + $0x68] sm:$0xff] }
  0x19   :  { %120 = vmatpush.bf16.msra.mxu0 %v907_v2  ;;  %283 = vmatpush.bf16.msra.mxu2 %v924_v11  ;;  %v921_v14 = vld [vmem:[#allocation7 + $0x60] sm:$0xff]  ;;  %v920_v25 = vld [vmem:[#allocation7 + $0x58] sm:$0xff]  ;;  %v919_v26 = vld [vmem:[#allocation7 + $0x50] sm:$0xff] }
  0x1a   :  { %202 = vmatpush.bf16.msra.mxu1 %v915_v3  ;;  %v971_v16 = vld [vmem:[#allocation8] ss:$0 sm:$0xff]  ;;  %v918_v27 = vld [vmem:[#allocation7 + $0x48] sm:$0xff]  ;;  %v932_v29 = vld [vmem:[#allocation7 + $0xb8] sm:$0xff] }
  0x1b   :  { %v917_v28 = vld [vmem:[#allocation7 + $0x40] sm:$0xff]  ;;  %377 = vmatpush.bf16.msra.mxu3 %v932_v29  ;;  %v931_v30 = vld [vmem:[#allocation7 + $0xb0] sm:$0xff]  ;;  %v930_v31 = vld [vmem:[#allocation7 + $0xa8] sm:$0xff] }
  0x1c   :  { %713 = vmatmul.msk.bf16.vlgmr.msra.gmra.mxu0 %vm109_vm0, %v906_v4  ;;  %v929_v32 = vld [vmem:[#allocation7 + $0xa0] sm:$0xff]  ;;  %v928_v41 = vld [vmem:[#allocation7 + $0x98] sm:$0xff]  ;;  %v927_v42 = vld [vmem:[#allocation7 + $0x90] sm:$0xff] }
  0x1d   :  { %284 = vmatpush.bf16.msra.mxu2 %v923_v12  ;;  %v972_v34 = vld [vmem:[#allocation8 + $0x1] ss:$0 sm:$0xff]  ;;  %v926_v43 = vld [vmem:[#allocation7 + $0x88] sm:$0xff]  ;;  %v940_v45 = vld [vmem:[#allocation7 + $0xf8] sm:$0xff] }
  0x1e   :  { %203 = vmatpush.bf16.msra.mxu1 %v914_v5  ;;  %v925_v44 = vld [vmem:[#allocation7 + $0x80] sm:$0xff]  ;;  %459 = vmatpush.bf16.msrb.mxu0 %v940_v45  ;;  %v939_v46 = vld [vmem:[#allocation7 + $0xf0] sm:$0xff]  ;;  %v938_v47 = vld [vmem:[#allocation7 + $0xe8] sm:$0xff] }
  0x1f   :  { %378 = vmatpush.bf16.msra.mxu3 %v931_v30  ;;  %v937_v48 = vld [vmem:[#allocation7 + $0xe0] sm:$0xff]  ;;  %v936_v57 = vld [vmem:[#allocation7 + $0xd8] sm:$0xff]  ;;  %v935_v58 = vld [vmem:[#allocation7 + $0xd0] sm:$0xff] }
  0x20   :  { %v973_v51 = vld [vmem:[#allocation8 + $0x2] ss:$0 sm:$0xff]  ;;  %v934_v59 = vld [vmem:[#allocation7 + $0xc8] sm:$0xff]  ;;  %v948_v61 = vld [vmem:[#allocation7 + $0x138] sm:$0xff] }
  0x21   :  { %285 = vmatpush.bf16.msra.mxu2 %v922_v13  ;;  %v933_v60 = vld [vmem:[#allocation7 + $0xc0] sm:$0xff]  ;;  %v947_v62 = vld [vmem:[#allocation7 + $0x130] sm:$0xff]  ;;  %v946_v63 = vld [vmem:[#allocation7 + $0x128] sm:$0xff] }
  0x22   :  { %204 = vmatpush.bf16.msra.mxu1 %v913_v6  ;;  %460 = vmatpush.bf16.msrb.mxu0 %v939_v46  ;;  %v945_v0 = vld [vmem:[#allocation7 + $0x120] sm:$0xff]  ;;  %v942_v11 = vld [vmem:[#allocation7 + $0x108] sm:$0xff]  ;;  %v956_v13 = vld [vmem:[#allocation7 + $0x178] sm:$0xff] }
  0x23   :  { %379 = vmatpush.bf16.msra.mxu3 %v930_v31  ;;  %v974_v2 = vld [vmem:[#allocation8 + $0x3] ss:$0 sm:$0xff]  ;;  %v976_v30 = vld [vmem:[#allocation8 + $0x5] ss:$0 sm:$0xff] }
  0x24   :  { %v941_v12 = vld [vmem:[#allocation7 + $0x100] sm:$0xff] }
  0x25   :  { %286 = vmatpush.bf16.msra.mxu2 %v921_v14  ;;  %v955_v14 = vld [vmem:[#allocation7 + $0x170] sm:$0xff] }
  0x26   :  { %205 = vmatpush.bf16.msra.mxu1 %v912_v7  ;;  %461 = vmatpush.bf16.msrb.mxu0 %v938_v47 }
  0x27   :  { %380 = vmatpush.bf16.msra.mxu3 %v929_v32 }
  0x29   :  { %287 = vmatpush.bf16.msra.mxu2 %v920_v25  ;;  %v952_v25 = vld [vmem:[#allocation7 + $0x158] sm:$0xff] }
  0x2a   :  { %206 = vmatpush.bf16.msra.mxu1 %v911_v8  ;;  %462 = vmatpush.bf16.msrb.mxu0 %v937_v48 }
  0x2b   :  { %381 = vmatpush.bf16.msra.mxu3 %v928_v41 }
  0x2d   :  { %288 = vmatpush.bf16.msra.mxu2 %v919_v26  ;;  %v951_v26 = vld [vmem:[#allocation7 + $0x150] sm:$0xff] }
  0x2e   :  { %207 = vmatpush.bf16.msra.mxu1 %v910_v9  ;;  %463 = vmatpush.bf16.msrb.mxu0 %v936_v57  ;;  %v944_v9 = vld [vmem:[#allocation7 + $0x118] sm:$0xff] }
  0x2f   :  { %382 = vmatpush.bf16.msra.mxu3 %v927_v42 }
  0x31   :  { %289 = vmatpush.bf16.msra.mxu2 %v918_v27  ;;  %v950_v27 = vld [vmem:[#allocation7 + $0x148] sm:$0xff] }
  0x32   :  { %208 = vmatpush.bf16.msra.mxu1 %v909_v10  ;;  %464 = vmatpush.bf16.msrb.mxu0 %v935_v58  ;;  %v943_v10 = vld [vmem:[#allocation7 + $0x110] sm:$0xff] }
  0x33   :  { %383 = vmatpush.bf16.msra.mxu3 %v926_v43 }
  0x35   :  { %290 = vmatpush.bf16.msra.mxu2 %v917_v28  ;;  %v949_v28 = vld [vmem:[#allocation7 + $0x140] sm:$0xff] }
  0x36   :  { %465 = vmatpush.bf16.msrb.mxu0 %v934_v59  ;;  %553 = vmatpush.bf16.msrb.mxu1 %v948_v61 }
  0x37   :  { %384 = vmatpush.bf16.msra.mxu3 %v925_v44  ;;  %v1114_v44 = vmov 9  }
  0x38   :  { %969 = vset.pattern.permute.xlu1 %v1114_v44  ;;  %970 = vset.pattern.permute.xlu0 %v1114_v44 }
  0x39   :  { %640 = vmatpush.bf16.msrb.mxu2 %v956_v13 }
  0x3a   :  { %466 = vmatpush.bf16.msrb.mxu0 %v933_v60  ;;  %554 = vmatpush.bf16.msrb.mxu1 %v947_v62 }
  0x3d   :  { %641 = vmatpush.bf16.msrb.mxu2 %v955_v14 }
  0x3e   :  { %555 = vmatpush.bf16.msrb.mxu1 %v946_v63 }
  0x42   :  { %556 = vmatpush.bf16.msrb.mxu1 %v945_v0 }
  0x46   :  { %557 = vmatpush.bf16.msrb.mxu1 %v944_v9 }
  0x4a   :  { %558 = vmatpush.bf16.msrb.mxu1 %v943_v10 }
  0x4e   :  { %559 = vmatpush.bf16.msrb.mxu1 %v942_v11 }
  0x52   :  { %560 = vmatpush.bf16.msrb.mxu1 %v941_v12 }
  0x99   :  { %v122_v15 = vpop.f32.mrf.mxu0 }
  0x9a   :  { %v123_v17 = vadd.f32 %v971_v16, %v122_v15  ;;  %v954_v15 = vld [vmem:[#allocation7 + $0x168] sm:$0xff] }
  0x9b   :  { %642 = vmatpush.bf16.msrb.mxu2 %v954_v15 }
  0x9c   :  { %v127_v19 = vmul.f32 0.1, %v123_v17 }
  0x9e   :  { %v129_v22 = vmax.f32 %v123_v17, %v127_v19  ;;  %v975_v19 = vld [vmem:[#allocation8 + $0x4] ss:$0 sm:$0xff] }
  0xa1   :  { %v124_v18 = vpop.f32.mrf.mxu0 }
  0xa2   :  { %v125_v20 = vadd.f32 %v971_v16, %v124_v18  ;;  %v953_v16 = vld [vmem:[#allocation7 + $0x160] sm:$0xff] }
  0xa3   :  { %643 = vmatpush.bf16.msrb.mxu2 %v953_v16 }
  0xa4   :  { %v128_v21 = vmul.f32 0.1, %v125_v20 }
  0xa6   :  { %v130_v23 = vmax.f32 %v125_v20, %v128_v21 }
  0xa7   :  { %644 = vmatpush.bf16.msrb.mxu2 %v952_v25 }
  0xa8   :  { %v131_v24 = vpack.c.bf16 %v130_v23, %v129_v22 }
  0xaa   :  { %209 = vmatmul.bf16.vlgmr.msra.gmra.mxu1 %v131_v24 }
  0xab   :  { %645 = vmatpush.bf16.msrb.mxu2 %v951_v26 }
  0xaf   :  { %646 = vmatpush.bf16.msrb.mxu2 %v950_v27 }
  0xb3   :  { %647 = vmatpush.bf16.msrb.mxu2 %v949_v28 }
 0x127   :  { %v210_v33 = vpop.f32.mrf.mxu1 }
 0x128   :  { %v211_v35 = vadd.f32 %v972_v34, %v210_v33 }
 0x12a   :  { %v215_v38 = vmax.f32 %v211_v35, 0.0 }
 0x12f   :  { %v212_v36 = vpop.f32.mrf.mxu1 }
 0x130   :  { %v213_v37 = vadd.f32 %v972_v34, %v212_v36 }
 0x132   :  { %v216_v39 = vmax.f32 %v213_v37, 0.0  ;;  %v977_v37 = vld [vmem:[#allocation8 + $0x6] ss:$0 sm:$0xff] }
 0x134   :  { %v217_v40 = vpack.c.bf16 %v216_v39, %v215_v38 }
 0x136   :  { %291 = vmatmul.bf16.vlgmr.msra.gmra.mxu2 %v217_v40 }
 0x1b9   :  { %v292_v49 = vpop.f32.mrf.mxu2 }
 0x1ba   :  { %v297_v50 = vadd.f32 %v292_v49, %v129_v22 }
 0x1bc   :  { %v304_v54 = vadd.f32 %v973_v51, %v297_v50 }
 0x1c1   :  { %v294_v52 = vpop.f32.mrf.mxu2 }
 0x1c2   :  { %v298_v53 = vadd.f32 %v294_v52, %v130_v23 }
 0x1c4   :  { %v305_v55 = vadd.f32 %v973_v51, %v298_v53 }
 0x1c6   :  { %v306_v56 = vpack.c.bf16 %v305_v55, %v304_v54 }
 0x1c8   :  { %385 = vmatmul.bf16.vlgmr.msra.gmra.mxu3 %v306_v56 }
 0x24b   :  { %v386_v1 = vpop.f32.mrf.mxu3 }
 0x24c   :  { %v387_v3 = vadd.f32 %v974_v2, %v386_v1 }
 0x24e   :  { %v391_v6 = vmax.f32 %v387_v3, 0.0 }
 0x253   :  { %v388_v4 = vpop.f32.mrf.mxu3 }
 0x254   :  { %v389_v5 = vadd.f32 %v974_v2, %v388_v4 }
 0x256   :  { %v392_v7 = vmax.f32 %v389_v5, 0.0 }
 0x258   :  { %v393_v8 = vpack.c.bf16 %v392_v7, %v391_v6 }
 0x25a   :  { %467 = vmatmul.bf16.vlgmr.msrb.gmra.mxu0 %v393_v8 }
 0x2d7   :  { %v468_v17 = vpop.f32.mrf.mxu0 }
 0x2d8   :  { %v473_v18 = vadd.f32 %v468_v17, %v304_v54 }
 0x2da   :  { %v480_v22 = vadd.f32 %v975_v19, %v473_v18 }
 0x2df   :  { %v470_v20 = vpop.f32.mrf.mxu0 }
 0x2e0   :  { %v474_v21 = vadd.f32 %v470_v20, %v305_v55 }
 0x2e2   :  { %v481_v23 = vadd.f32 %v975_v19, %v474_v21 }
 0x2e4   :  { %v482_v24 = vpack.c.bf16 %v481_v23, %v480_v22 }
 0x2e6   :  { %561 = vmatmul.bf16.vlgmr.msrb.gmra.mxu1 %v482_v24 }
 0x363   :  { %v562_v29 = vpop.f32.mrf.mxu1 }
 0x364   :  { %v563_v31 = vadd.f32 %v976_v30, %v562_v29 }
 0x366   :  { %v567_v34 = vmax.f32 %v563_v31, 0.0 }
 0x36b   :  { %v564_v32 = vpop.f32.mrf.mxu1 }
 0x36c   :  { %v565_v33 = vadd.f32 %v976_v30, %v564_v32 }
 0x36e   :  { %v568_v35 = vmax.f32 %v565_v33, 0.0 }
 0x370   :  { %v569_v36 = vpack.c.bf16 %v568_v35, %v567_v34 }
 0x372   :  { %648 = vmatmul.bf16.vlgmr.msrb.gmra.mxu2 %v569_v36 }
 0x3f5   :  { %v649_v38 = vpop.f32.mrf.mxu2 }
 0x3f6   :  { %v650_v39 = vadd.f32 %v977_v37, %v649_v38 }
 0x3f8   :  { %v654_v40 = vmul.f32 0.125, %v650_v39 }
 0x3fa   :  { %658 = vrot.lane.b32.xlu0 %v654_v40, %s1113_s10 }
 0x3fd   :  { %v651_v41 = vpop.f32.mrf.mxu2 }
 0x3fe   :  { %v652_v42 = vadd.f32 %v977_v37, %v651_v41 }
 0x400   :  { %v655_v43 = vmul.f32 0.125, %v652_v42 }
 0x402   :  { %660 = vrot.lane.b32.xlu0 %v655_v43, %s1113_s10 }
 0x46c   :  { %v659_v45 = vpop.permute.xlu0 %658 }
 0x46d   :  { %v664_v46 = vsub.f32 %v650_v39, %v659_v45 }
 0x46f   :  { %668 = vperm.xlu1 %969, %v664_v46  }
 0x474   :  { %v661_v47 = vpop.permute.xlu0 %660 }
 0x475   :  { %v665_v48 = vsub.f32 %v652_v42, %v661_v47 }
 0x477   :  { %673 = vperm.xlu1 %969, %v665_v48  }
 0x4e1   :  { %v669_v49 = vpop.permute.xlu1 %668 }
 0x4e2   :  { %v676_v50 = vadd.f32 %v669_v49, %v650_v39 }
 0x4e4   :  { %678 = vst [vmem:[#allocation10] sm:$0xff] %v676_v50 }
 0x4e9   :  { %v674_v51 = vpop.permute.xlu1 %673 }
 0x4ea   :  { %v677_v52 = vadd.f32 %v674_v51, %v652_v42 }
 0x4ec   :  { %679 = vst [vmem:[#allocation10 + $0x8] sm:$0xff] %v677_v52 }
 0x4ed   :  { %692 = dma.vmem_to_hbm [thread:$0]  %s685_s3, 256, %s687_s13, [#allocation4], %s1116_s14, %s1116_s14, %s1117_s15  }
 0x4ee   :  { %1104 = dma.done.wait [#allocation4], 256  }
 0x4ef   :  { %1105 = vsyncadd [#allocation4], 4294967040 }
 0x4f0   :  { %697 = vsyncpa [#allocation3], 1 }
 0x4f1   :  { %698 = vsyncpa [#allocation6], 1 }
 0x4f2   :  { %699 = vsyncpa [#allocation9], 1 }
 0x4f3   :  { %700 = vsyncpa [#allocation4], 1 }

</bundles_post_ra>
